<compile_context>
chip_gen: v7x
topology: tpu7x:2x2x1
jax: 0.10.0
libtpu: 0.0.40
codegen_flags: <defaults>
</compile_context>

<pallas_src>
import functools
from typing import NamedTuple

import jax
import jax.numpy as jnp
from jax.experimental import pallas as pl
from jax.experimental.pallas import tpu as pltpu


def _round_up(x: int, m: int) -> int:
    return ((x + m - 1) // m) * m


def _cdiv(a: int, b: int) -> int:
    return (a + b - 1) // b


# ----------------------------------------------------------------------------
# Kernel: fused matmul -> bias -> tanh -> matmul -> bias, all in VMEM.
# ----------------------------------------------------------------------------
def _mlp_kernel(x_ref, w1_ref, b1_ref, w2_ref, b2_ref, o_ref):
    x = x_ref[...]
    h = jnp.dot(x, w1_ref[...], preferred_element_type=jnp.float32) + b1_ref[...]
    h = jnp.tanh(h)  # EUP transcendental slot -- keep as jnp.tanh (free overlap)
    y = jnp.dot(h.astype(w2_ref.dtype), w2_ref[...],
                preferred_element_type=jnp.float32) + b2_ref[...]
    o_ref[...] = y.astype(o_ref.dtype)


# ----------------------------------------------------------------------------
# One-time parameter preparation (OUTSIDE the per-call jit).
# ----------------------------------------------------------------------------
class PaddedParams(NamedTuple):
    w1: jax.Array  # (d_in_p, h_p)
    b1: jax.Array  # (1, h_p)
    w2: jax.Array  # (h_p, d_out_p)
    b2: jax.Array  # (1, d_out_p)


def prepare_params(w1, b1, w2, b2):
    """Zero-pad weights/biases to lane-dense 128-multiple shapes, once."""
    d_in, h = w1.shape
    d_out = w2.shape[1]
    d_in_p, h_p, d_out_p = (_round_up(d, 128) for d in (d_in, h, d_out))
    w1p = jnp.zeros((d_in_p, h_p), w1.dtype).at[:d_in, :h].set(w1)
    b1p = jnp.zeros((1, h_p), b1.dtype).at[:, :h].set(jnp.reshape(b1, (1, h)))
    w2p = jnp.zeros((h_p, d_out_p), w2.dtype).at[:h, :d_out].set(w2)
    b2p = jnp.zeros((1, d_out_p), b2.dtype).at[:, :d_out].set(jnp.reshape(b2, (1, d_out)))
    return PaddedParams(w1p, b1p, w2p, b2p), d_out


# ----------------------------------------------------------------------------
# VMEM budget / batch-tile derivation (generation aware).
# ----------------------------------------------------------------------------
def _vmem_budget_bytes() -> int:
    cap = 128 * 1024 * 1024  # conservative default (v5e/v6e)
    try:
        info = pltpu.get_tpu_info()
        cap = int(getattr(info, "vmem_capacity_bytes", cap))
    except Exception:
        pass
    # Headroom for compiler-internal scratch / spills:
    #   v7x  (64 MiB/TC)  -> ~44 MiB budget
    #   v5e/v6e (128 MiB) -> ~96 MiB budget
    return cap - max(20 * 1024 * 1024, cap // 4)


def _derive_block_b(B, d_in_p, h_p, d_out_p, itemsize, vmem_budget, cap=1024):
    # Single-buffered resident weights/biases (pl.Buffered(1) on their specs).
    fixed = (d_in_p * h_p + h_p * d_out_p + h_p + d_out_p) * itemsize
    # Double-buffered x/out tiles + f32 intermediates per batch row.
    per_row = 2 * (d_in_p + d_out_p) * itemsize + (h_p + d_out_p) * 4
    avail = vmem_budget - fixed
    if avail < 8 * per_row:
        # TODO(synk): add a K-tiled path (grid axis over d_in_p marked
        # "arbitrary" with an f32 VMEM accumulator) instead of fully-resident
        # weights -- required on v7x (64 MiB/TC) for ~4k x 4k f32 weights.
        raise ValueError(
            "Weights do not fit in the VMEM budget with the minimum batch "
            "tile; these shapes need the K-tiled variant.")
    max_rows = max(8, (avail // per_row) // 8 * 8)
    block_b = max(8, min(cap, _round_up(B, 8), max_rows))
    # Megacore (v7x, 2 TCs): keep >=2 grid steps whenever the batch can split.
    if B > 8 and _cdiv(B, block_b) < 2:
        block_b = max(8, _round_up(_cdiv(B, 2), 8))
    return block_b


# ----------------------------------------------------------------------------
# Forward pass.
# ----------------------------------------------------------------------------
@functools.partial(jax.jit, static_argnames=("d_out", "block_b", "use_pallas"))
def nonlinear_layer_without_conv(x, params, *, d_out, block_b=None, use_pallas=None):
    """x: (B, d_in) unpadded; params: PaddedParams; d_out: original out dim."""
    w1p, b1p, w2p, b2p = params
    B, d_in = x.shape
    d_in_p, h_p = w1p.shape
    d_out_p = w2p.shape[1]
    in_dt = x.dtype

    # Size-based dispatch: tiny problems are strictly faster as a plain fusion.
    if use_pallas is None:
        use_pallas = (B * d_in_p * h_p) >= (1 << 20)
    if not use_pallas:
        xw = x if d_in == d_in_p else jnp.pad(x, ((0, 0), (0, d_in_p - d_in)))
        h = jnp.tanh(jnp.dot(xw, w1p, preferred_element_type=jnp.float32) + b1p)
        y = jnp.dot(h.astype(w2p.dtype), w2p,
                    preferred_element_type=jnp.float32) + b2p
        return y[:, :d_out].astype(in_dt)

    # Lane-dense feature pad on x only when needed (fast path: no pad at all).
    xp = x if d_in == d_in_p else jnp.pad(x, ((0, 0), (0, d_in_p - d_in)))

    itm = jnp.dtype(in_dt).itemsize
    budget = _vmem_budget_bytes()
    if block_b is None:
        block_b = _derive_block_b(B, d_in_p, h_p, d_out_p, itm, budget)
    block_b = max(8, _round_up(int(block_b), 8))
    # Ragged last batch tile is boundary-clipped by Pallas: no HBM pad of x,
    # no batch slice of the output.
    grid = (_cdiv(B, block_b),)

    # Call-invariant operands: constant index_map -> single buffer is enough.
    inv = dict(pipeline_mode=pl.Buffered(1))

    out_padded = pl.pallas_call(
        _mlp_kernel,
        out_shape=jax.ShapeDtypeStruct((B, d_out_p), in_dt),
        grid_spec=pltpu.PrefetchScalarGridSpec(
            num_scalar_prefetch=0,
            grid=grid,
            in_specs=[
                pl.BlockSpec((block_b, d_in_p), lambda i: (i, 0)),
                pl.BlockSpec((d_in_p, h_p), lambda i: (0, 0), **inv),
                pl.BlockSpec((1, h_p), lambda i: (0, 0), **inv),
                pl.BlockSpec((h_p, d_out_p), lambda i: (0, 0), **inv),
                pl.BlockSpec((1, d_out_p), lambda i: (0, 0), **inv),
            ],
            out_specs=pl.BlockSpec((block_b, d_out_p), lambda i: (i, 0)),
        ),
        compiler_params=pltpu.CompilerParams(
            dimension_semantics=("parallel",),
            vmem_limit_bytes=int(budget),
        ),
    )(xp, w1p, b1p, w2p, b2p)

    return out_padded if d_out == d_out_p else out_padded[:, :d_out]


# ----------------------------------------------------------------------------
# Demo / self-test.
# ----------------------------------------------------------------------------
def _init_linear(key, fan_in, fan_out, dtype=jnp.float32):
    """PyTorch-style init U(-1/sqrt(fan_in), 1/sqrt(fan_in)); weight already
    transposed to (fan_in, fan_out), bias (1, fan_out)."""
    kw, kb = jax.random.split(key)
    bound = 1.0 / (fan_in ** 0.5)
    w = jax.random.uniform(kw, (fan_in, fan_out), dtype, -bound, bound)
    b = jax.random.uniform(kb, (1, fan_out), dtype, -bound, bound)
    return w, b


if __name__ == "__main__":
    # Module-consistent small shapes:
    #   lin_layer1_in_dim=32, lin_layer1_out_dim=64, lin_layer2_out_dim=16
    D_IN, HIDDEN, D_OUT = 32, 64, 16

    root = jax.random.PRNGKey(0)
    kx1, kx2, kx3, k1, k2 = jax.random.split(root, 5)

    w1, b1 = _init_linear(k1, D_IN, HIDDEN)
    w2, b2 = _init_linear(k2, HIDDEN, D_OUT)

    def ref_fn(x):
        return jnp.tanh(x @ w1 + b1) @ w2 + b2

    # Pad parameters ONCE, outside the per-call jit.
    params, d_out = prepare_params(w1, b1, w2, b2)

    # Case 1: small, nicely shaped batch (forced onto the Pallas path).
    x1 = jax.random.normal(kx1, (16, D_IN), jnp.float32)
    o1 = jax.block_until_ready(
        nonlinear_layer_without_conv(x1, params, d_out=d_out, use_pallas=True))
    assert o1.shape == (16, D_OUT)
    assert jnp.allclose(o1, ref_fn(x1), atol=1e-5, rtol=1e-5), "mismatch (B=16)"

    # Case 2: ragged batch -> boundary-clipped last tile, 2-step grid.
    x2 = jax.random.normal(kx2, (37, D_IN), jnp.float32)
    o2 = jax.block_until_ready(
        nonlinear_layer_without_conv(x2, params, d_out=d_out, use_pallas=True))
    assert o2.shape == (37, D_OUT)
    assert jnp.allclose(o2, ref_fn(x2), atol=1e-5, rtol=1e-5), "mismatch (B=37)"

    # Case 3: bf16 operands (native MXU path on v6e/v7x), f32 accumulation.
    params_bf16 = PaddedParams(*(p.astype(jnp.bfloat16) for p in params))
    x3 = jax.random.normal(kx3, (64, D_IN), jnp.float32)
    o3 = jax.block_until_ready(
        nonlinear_layer_without_conv(x3.astype(jnp.bfloat16), params_bf16,
                                     d_out=d_out, use_pallas=True))
    assert o3.shape == (64, D_OUT)
    assert jnp.allclose(o3.astype(jnp.float32), ref_fn(x3),
                        atol=1e-1, rtol=1e-1), "mismatch (bf16)"

    # Case 4: auto-dispatch -- tiny problem falls back to the plain XLA fusion.
    o4 = jax.block_until_ready(
        nonlinear_layer_without_conv(x1, params, d_out=d_out))
    assert jnp.allclose(o4, ref_fn(x1), atol=1e-5, rtol=1e-5), "mismatch (dispatch)"

    print("KERNEL_OK")
</pallas_src>

<mosaic_0001>
module attributes {stable_mosaic.version = 11 : i64} {
  func.func @_mlp_kernel(%arg0: i32, %arg1: memref<8x128xf32, #tpu.memory_space<vmem>>, %arg2: memref<128x128xf32, #tpu.memory_space<vmem>>, %arg3: memref<1x128xf32, #tpu.memory_space<vmem>>, %arg4: memref<128x128xf32, #tpu.memory_space<vmem>>, %arg5: memref<1x128xf32, #tpu.memory_space<vmem>>, %arg6: memref<8x128xf32, #tpu.memory_space<vmem>>) attributes {dimension_semantics = [#tpu.dimension_semantics<parallel>], iteration_bounds = array<i64: 2>, scalar_prefetch = 0 : i64, scratch_operands = 0 : i64, tpu.core_type = #tpu.core_type<tc>, window_params = [{transform_indices = @transform_0, window_bounds = array<i64: 8, 128>}, {pipeline_mode = #tpu.pipeline_mode<synchronous>, transform_indices = @transform_1, window_bounds = array<i64: 128, 128>}, {pipeline_mode = #tpu.pipeline_mode<synchronous>, transform_indices = @transform_2, window_bounds = array<i64: 1, 128>}, {pipeline_mode = #tpu.pipeline_mode<synchronous>, transform_indices = @transform_3, window_bounds = array<i64: 128, 128>}, {pipeline_mode = #tpu.pipeline_mode<synchronous>, transform_indices = @transform_4, window_bounds = array<i64: 1, 128>}, {transform_indices = @transform_5, window_bounds = array<i64: 8, 128>}]} {
    %c0 = arith.constant 0 : index
    %c0_0 = arith.constant 0 : index
    %0 = vector.load %arg1[%c0, %c0_0] : memref<8x128xf32, #tpu.memory_space<vmem>>, vector<8x128xf32>
    %c0_1 = arith.constant 0 : index
    %c0_2 = arith.constant 0 : index
    %1 = vector.load %arg2[%c0_1, %c0_2] : memref<128x128xf32, #tpu.memory_space<vmem>>, vector<128x128xf32>
    %cst = arith.constant dense<0.000000e+00> : vector<8x128xf32>
    %2 = tpu.matmul %0, %1, %cst {dimension_numbers = #tpu.dot_dimension_numbers<[1], [0], [0], [1], [0, 0, 1, 1], [], []>} : vector<8x128xf32>, vector<128x128xf32>, vector<8x128xf32> -> vector<8x128xf32>
    %c0_3 = arith.constant 0 : index
    %c0_4 = arith.constant 0 : index
    %3 = vector.load %arg3[%c0_3, %c0_4] : memref<1x128xf32, #tpu.memory_space<vmem>>, vector<1x128xf32>
    %4 = vector.broadcast %3 : vector<1x128xf32> to vector<8x128xf32>
    %5 = arith.addf %2, %4 : vector<8x128xf32>
    %6 = math.tanh %5 : vector<8x128xf32>
    %c0_5 = arith.constant 0 : index
    %c0_6 = arith.constant 0 : index
    %7 = vector.load %arg4[%c0_5, %c0_6] : memref<128x128xf32, #tpu.memory_space<vmem>>, vector<128x128xf32>
    %cst_7 = arith.constant dense<0.000000e+00> : vector<8x128xf32>
    %8 = tpu.matmul %6, %7, %cst_7 {dimension_numbers = #tpu.dot_dimension_numbers<[1], [0], [0], [1], [0, 0, 1, 1], [], []>} : vector<8x128xf32>, vector<128x128xf32>, vector<8x128xf32> -> vector<8x128xf32>
    %c0_8 = arith.constant 0 : index
    %c0_9 = arith.constant 0 : index
    %9 = vector.load %arg5[%c0_8, %c0_9] : memref<1x128xf32, #tpu.memory_space<vmem>>, vector<1x128xf32>
    %10 = vector.broadcast %9 : vector<1x128xf32> to vector<8x128xf32>
    %11 = arith.addf %8, %10 : vector<8x128xf32>
    %c0_10 = arith.constant 0 : index
    %c0_11 = arith.constant 0 : index
    %12 = vector.load %arg6[%c0_10, %c0_11] : memref<8x128xf32, #tpu.memory_space<vmem>>, vector<8x128xf32>
    tpu.vector_store %arg6[%c0_10, %c0_11], %11 {strides = array<i32>} : memref<8x128xf32, #tpu.memory_space<vmem>>, vector<8x128xf32>,
    return
  }
  func.func @transform_0(%arg0: i32) -> (i32, i32) {
    %c0_i32 = arith.constant 0 : i32
    %c0_i32_0 = arith.constant 0 : i32
    return %arg0, %c0_i32 : i32, i32
  }
  func.func @transform_1(%arg0: i32) -> (i32, i32) {
    %c0_i32 = arith.constant 0 : i32
    %c0_i32_0 = arith.constant 0 : i32
    %c0_i32_1 = arith.constant 0 : i32
    return %c0_i32, %c0_i32_0 : i32, i32
  }
  func.func @transform_2(%arg0: i32) -> (i32, i32) {
    %c0_i32 = arith.constant 0 : i32
    %c0_i32_0 = arith.constant 0 : i32
    %c0_i32_1 = arith.constant 0 : i32
    return %c0_i32, %c0_i32_0 : i32, i32
  }
  func.func @transform_3(%arg0: i32) -> (i32, i32) {
    %c0_i32 = arith.constant 0 : i32
    %c0_i32_0 = arith.constant 0 : i32
    %c0_i32_1 = arith.constant 0 : i32
    return %c0_i32, %c0_i32_0 : i32, i32
  }
  func.func @transform_4(%arg0: i32) -> (i32, i32) {
    %c0_i32 = arith.constant 0 : i32
    %c0_i32_0 = arith.constant 0 : i32
    %c0_i32_1 = arith.constant 0 : i32
    return %c0_i32, %c0_i32_0 : i32, i32
  }
  func.func @transform_5(%arg0: i32) -> (i32, i32) {
    %c0_i32 = arith.constant 0 : i32
    %c0_i32_0 = arith.constant 0 : i32
    return %arg0, %c0_i32 : i32, i32
  }
}

</mosaic_0001>

<bundles_post_ra>
// kernel: nonlinear_layer_without_conv.1
= control target key start
LH: loop header
LB: loop body
LE: loop exit
PB: predicated region body
PF: predicated region fallthrough
CT: control target
= control target key end

     0   :  { %10 = vsyncpa [#allocation3], 0  ;;  %s1436_s0 = inlined_call_operand.hbm [shape: f32[16,128], index: 0, kind: input, shape index: {}]   ;;  %s1437_s1 = inlined_call_operand.hbm [shape: f32[128,128], index: 1, kind: input, shape index: {}]   ;;  %s1438_s2 = inlined_call_operand.hbm [shape: f32[1,128], index: 2, kind: input, shape index: {}]   ;;  %s1439_s3 = inlined_call_operand.hbm [shape: f32[128,128], index: 3, kind: input, shape index: {}]   ;;  %s1440_s4 = inlined_call_operand.hbm [shape: f32[1,128], index: 4, kind: input, shape index: {}]   ;;  %s1441_s5 = inlined_call_operand.hbm [shape: f32[16,128], index: 5, kind: output, shape index: {}]  }
   0x1   :  { %12 = vsyncpa [#allocation3 + $0x1], 0 }
   0x2   :  { %13 = vsyncpa [#allocation6], 0 }
   0x3   :  { %14 = vsyncpa [#allocation9], 0 }
   0x4   :  { %15 = vsyncpa [#allocation4], 0 }
   0x5   :  { %17 = vsyncpa [#allocation4 + $0x1], 0  ;;  %s1132_s18 = smov 0   ;;  %s1134_s19 = smov 0  }
   0x6   :  { %s1136_s20 = smov 0   ;;  %s1138_s21 = smov 0  }
   0x7 LB: > { %s1091_s22 = smov [#allocation5]   ;;  %s1153_s24 = sadd.s32 4294967295, %s1089_s21   ;;  %s1089_s21 = sphi %s1138_s21, %s1465_s21   ;;  %s1085_s20 = sphi %s1136_s20, %s1464_s20   ;;  %s1081_s19 = sphi %s1134_s19, %s1463_s19   ;;  %s1077_s18 = sphi %s1132_s18, %s1462_s18  }
   0x8   : > { %s176_s23 = sshll.u32 %s1091_s22, 4  ;;  %p606_p0 = scmp.ge.s32.totalorder %s1089_s21, 1  ;;  %s1158_s23 = int_to_ptr.vmem [resolvable:$true] %s176_s23 }
   0x9   : > { %p1442_p1 = scmp.eq.s32.totalorder %s1153_s24, 0  ;;  %p164_p2 = scmp.lt.s32.totalorder %s1089_s21, 3 }
   0xa   : > { %s1092_s26 = smov [#allocation8]   ;;  %s1093_s29 = smov [#allocation7]  }
   0xb   : > { %p1160_p3 = pnand %p606_p0, %p164_p2  ;;  %s200_s27 = sshll.u32 %s1092_s26, 4  ;;  %s1173_s27 = int_to_ptr.vmem [resolvable:$true] %s200_s27 }
   0xc   : > { %s190_s30 = sshll.u32 %s1093_s29, 4  ;;  %s873_s8 = scalar_lea.hbm %s1437_s1, 2048  ;;  %s1175_s30 = int_to_ptr.vmem [resolvable:$true] %s190_s30 }
   0xd   : > { %s1445_s25 = scalar_select %p1160_p3, 1, 0 }
   0xe   : > { %p799_p5 = pneg %p1160_p3  ;;  %p874_p7 = scmp.ne.s32.totalorder %s1437_s1, %s873_s8 }
   0xf   : > { %p880_p11 = scmp.lt.u32.totalorder %s873_s8, %s1437_s1 }
  0x10   : > { %p1169_p6 = pnand %p799_p5, %p1442_p1 }
  0x12   : > { %p1185_p8 = pneg %p1169_p6 }
  0x14   : > { %p876_p9 = pnand %p1185_p8, %p874_p7 }
  0x16   : > { %p877_p10 = pneg %p876_p9 }
  0x18   : > { %p882_p12 = pnand %p880_p11, %p877_p10 }
  0x1a   : > { %885 = shalt.err (!%p882_p12)
}
  0x1b   : > { %s886_s14 = scalar_lea.vmem %s1158_s23, 2048  ;;  %p894_p5 = scmp.lt.s32.totalorder %s1158_s23, %s1158_s23 }
  0x1c   : > { %p887_p13 = scmp.ne.s32.totalorder %s1158_s23, %s886_s14  ;;  %p895_p4 = scmp.lt.s32.totalorder %s886_s14, %s886_s14 }
  0x1e   : > { %p889_p0 = pnand %p887_p13, %p1185_p8  ;;  %p896_p7 = por %p895_p4, %p894_p5 }
  0x20   : > { %p890_p2 = pneg %p889_p0 }
  0x22   : > { %p897_p9 = pnand %p896_p7, %p890_p2 }
  0x24   : > { %900 = shalt.err (!%p897_p9)
}
  0x25   : > { %s1094_s15 = smov 128   ;;  %s1095_s16 = smov 8  }
  0x26   : > { %802 = dma.hbm_to_vmem [thread:$0]  (!%p1169_p6), %s1437_s1, 2048, %s1158_s23, [#allocation6], %s1094_s15, %s1094_s15, %s1095_s16  }
  0x27   : > { %s901_s6 = scalar_lea.hbm %s1439_s3, 2048 }
  0x28   : > { %p902_p4 = scmp.ne.s32.totalorder %s1439_s3, %s901_s6  ;;  %p908_p12 = scmp.lt.u32.totalorder %s901_s6, %s1439_s3 }
  0x2a   : > { %p904_p10 = pnand %p902_p4, %p1185_p8 }
  0x2c   : > { %p905_p11 = pneg %p904_p10 }
  0x2e   : > { %p910_p13 = pnand %p908_p12, %p905_p11 }
  0x30   : > { %913 = shalt.err (!%p910_p13)
}
  0x31   : > { %s914_s23 = scalar_lea.vmem %s1173_s27, 2048  ;;  %p922_p7 = scmp.lt.s32.totalorder %s1173_s27, %s1173_s27 }
  0x32   : > { %p915_p0 = scmp.ne.s32.totalorder %s1173_s27, %s914_s23  ;;  %p923_p9 = scmp.lt.s32.totalorder %s914_s23, %s914_s23 }
  0x34   : > { %p917_p2 = pnand %p915_p0, %p1185_p8  ;;  %p924_p4 = por %p923_p9, %p922_p7 }
  0x36   : > { %p918_p5 = pneg %p917_p2 }
  0x38   : > { %p925_p10 = pnand %p924_p4, %p918_p5 }
  0x3a   : > { %928 = shalt.err (!%p925_p10)
}
  0x3b   : > { %808 = dma.hbm_to_vmem [thread:$0]  (!%p1169_p6), %s1439_s3, 2048, %s1173_s27, [#allocation9], %s1094_s15, %s1094_s15, %s1095_s16  }
  0x3c   : > { %s929_s22 = scalar_lea.hbm %s1438_s2, 16 }
  0x3d   : > { %p930_p11 = scmp.ne.s32.totalorder %s1438_s2, %s929_s22  ;;  %p936_p0 = scmp.lt.u32.totalorder %s929_s22, %s1438_s2 }
  0x3f   : > { %p932_p12 = pnand %p930_p11, %p1185_p8 }
  0x41   : > { %p933_p13 = pneg %p932_p12 }
  0x43   : > { %p938_p2 = pnand %p936_p0, %p933_p13 }
  0x45   : > { %941 = shalt.err (!%p938_p2)
}
  0x46   : > { %s942_s27 = scalar_lea.vmem %s1175_s30, 16  ;;  %s949_s15 = scalar_lea.vmem %s1175_s30, 32 }
  0x47   : > { %p943_p5 = scmp.ne.s32.totalorder %s1175_s30, %s942_s27  ;;  %p950_p4 = scmp.lt.s32.totalorder %s1175_s30, %s1175_s30 }
  0x48   : > { %p951_p10 = scmp.lt.s32.totalorder %s949_s15, %s942_s27 }
  0x49   : > { %p945_p7 = pnand %p943_p5, %p1185_p8 }
  0x4a   : > { %p952_p11 = por %p951_p10, %p950_p4 }
  0x4b   : > { %p946_p9 = pneg %p945_p7 }
  0x4d   : > { %p953_p12 = pnand %p952_p11, %p946_p9 }
  0x4f   : > { %956 = shalt.err (!%p953_p12)
}
  0x50   : > { %805 = dma.hbm_to_vmem [thread:$0]  (!%p1169_p6), %s1438_s2, 16, %s1175_s30, [#allocation6]  }
  0x51   : > { %s1096_s9 = smov [#allocation10]   ;;  %s957_s13 = scalar_lea.hbm %s1440_s4, 16 }
  0x52   : > { %s214_s10 = sshll.u32 %s1096_s9, 4  ;;  %p958_p13 = scmp.ne.s32.totalorder %s1440_s4, %s957_s13  ;;  %s215_s10 = int_to_ptr.vmem [resolvable:$true] %s214_s10 }
  0x53   : > { %p964_p5 = scmp.lt.u32.totalorder %s957_s13, %s1440_s4 }
  0x54   : > { %p960_p0 = pnand %p958_p13, %p1185_p8 }
  0x56   : > { %p961_p2 = pneg %p960_p0 }
  0x58   : > { %p966_p7 = pnand %p964_p5, %p961_p2 }
  0x5a   : > { %969 = shalt.err (!%p966_p7)
}
  0x5b   : > { %s970_s30 = scalar_lea.vmem %s215_s10, 16  ;;  %s977_s29 = scalar_lea.vmem %s215_s10, 32 }
  0x5c   : > { %p971_p9 = scmp.ne.s32.totalorder %s215_s10, %s970_s30  ;;  %p978_p11 = scmp.lt.s32.totalorder %s215_s10, %s215_s10 }
  0x5d   : > { %p979_p12 = scmp.lt.s32.totalorder %s977_s29, %s970_s30 }
  0x5e   : > { %p973_p4 = pnand %p971_p9, %p1185_p8 }
  0x5f   : > { %p980_p1 = por %p979_p12, %p978_p11 }
  0x60   : > { %p974_p10 = pneg %p973_p4 }
  0x62   : > { %p981_p3 = pnand %p980_p1, %p974_p10 }
  0x64   : > { %984 = shalt.err (!%p981_p3)
}
  0x65   : > { %811 = dma.hbm_to_vmem [thread:$0]  (!%p1169_p6), %s1440_s4, 16, %s215_s10, [#allocation9]  }
  0x66   : > { %s605_s11 = sadd.s32 4294967294, %s1089_s21   ;;  %s1273_s28 = sadd.s32 1, %s1089_s21  }
  0x67   : > { %s27_s27 = ssub.s32 %s1089_s21, %s1273_s28  ;;  %s30_s15 = sadd.s32 1, %s1085_s20 }
  0x68   : > { %p28_p1 = scmp.eq.s32.totalorder %s27_s27, 0  ;;  %p37_p3 = scmp.ne.s32.totalorder %s1085_s20, %s1081_s19 }
  0x69   : > { %p38_p8 = scmp.eq.s32.totalorder %s1089_s21, 0  ;;  %p43_p13 = scmp.ne.s32.totalorder %s1081_s19, %s1077_s18 }
  0x6a   : > { %s1284_s16 = scalar_select %p28_p1, %s1085_s20, %s30_s15  }
  0x6b   : > { %p1286_p0 = por %p38_p8, %p37_p3  ;;  %p1449_p2 = scmp.eq.s32.totalorder %s1153_s24, 0 }
  0x6c   : > { %p151_p5 = scmp.eq.s32.totalorder %s1153_s24, 1  ;;  %p157_p7 = scmp.eq.s32.totalorder %s605_s11, 1 }
  0x6d   : > { %p1292_p6 = por %p1449_p2, %p43_p13  ;;  %p824_p9 = scmp.lt.s32.totalorder %s1089_s21, 2 }
  0x6e   : > { %s225_s10 = sand.u32 1, %s1085_s20   ;;  %p1299_p4 = por %p151_p5, %p37_p3 }
  0x6f   : > { %p1303_p10 = por %p157_p7, %p43_p13  ;;  %s612_s13 = sshll.u32 %s225_s10, 3 }
  0x70   : > { %s1451_s23 = scalar_select %p1299_p4, 1, 0 }
  0x71   : > { %s1452_s12 = scalar_select %p1303_p10, 1, 0 }
  0x72   : > { %s613_s14 = sshll.u32 %s1089_s21, 7  ;;  %s229_s30 = scalar_lea.vmem [#allocation2], %s612_s13 }
  0x73   : > { %s1311_s26 = scalar_lea.hbm %s1436_s0, %s613_s14  ;;  %s236_s29 = sshll.u32 %s229_s30, 4  ;;  %s1313_s29 = int_to_ptr.vmem [resolvable:$true] %s236_s29 }
  0x74   : > { %p1317_p11 = pnand %p824_p9, %p1286_p0  ;;  %s226_s7 = scalar_lea.sflag [#allocation3], %s225_s10 }
  0x75   : > { %s985_s11 = scalar_lea.hbm %s1311_s26, 128  ;;  %s990_s13 = scalar_lea.hbm %s1436_s0, 256 }
  0x76   : > { %p986_p12 = scmp.ne.s32.totalorder %s1311_s26, %s985_s11  ;;  %p987_p1 = pneg %p1317_p11 }
  0x77   : > { %p991_p13 = scmp.lt.u32.totalorder %s1311_s26, %s1436_s0  ;;  %p992_p0 = scmp.lt.u32.totalorder %s990_s13, %s985_s11 }
  0x78   : > { %p988_p3 = pnand %p987_p1, %p986_p12  ;;  %p994_p5 = scmp.lt.u32.totalorder %s985_s11, %s1311_s26 }
  0x79   : > { %p993_p2 = por %p992_p0, %p991_p13 }
  0x7a   : > { %p989_p8 = pneg %p988_p3 }
  0x7b   : > { %p995_p7 = por %p994_p5, %p993_p2 }
  0x7d   : > { %p996_p9 = pnand %p995_p7, %p989_p8 }
  0x7f   : > { %999 = shalt.err (!%p996_p9)
}
  0x80   : > { %s1000_s10 = scalar_lea.vmem %s1313_s29, 128  ;;  %s1097_s17 = smov [#allocation2]  }
  0x81   : > { %p1001_p12 = scmp.ne.s32.totalorder %s1313_s29, %s1000_s10  ;;  %s1005_s22 = sshll.u32 %s1097_s17, 4  ;;  %s1006_s22 = int_to_ptr.vmem [resolvable:$false] %s1005_s22 }
  0x82   : > { %s1007_s30 = scalar_lea.vmem %s1006_s22, 256  ;;  %p1008_p4 = scmp.lt.s32.totalorder %s1313_s29, %s1006_s22 }
  0x83   : > { %p1003_p3 = pnand %p1001_p12, %p987_p1  ;;  %p1009_p13 = scmp.lt.s32.totalorder %s1007_s30, %s1000_s10 }
  0x85   : > { %p1004_p10 = pneg %p1003_p3  ;;  %p1010_p0 = por %p1009_p13, %p1008_p4 }
  0x87   : > { %p1011_p2 = pnand %p1010_p0, %p1004_p10 }
  0x89   : > { %1014 = shalt.err (!%p1011_p2)
}
  0x8a   : > { %815 = dma.hbm_to_vmem [thread:$0]  (!%p1317_p11), %s1311_s26, 128, %s1313_s29, %s226_s7  }
  0x8b   : > { %p1454_p8 = scmp.ne.s32.totalorder %s1445_s25, 0 }
  0x8c   : > { %s1349_s11 = sand.u32 (!%p1454_p8), 1, %s1081_s19  }
  0x8d   : > { %245 = sbr.rel (%p1454_p8) target bundleno = 642 (0x282), region = 40  ;;  %s615_s27 = sshll.u32 (!%p1454_p8), %s1349_s11, 3 }
  0x8e   : > { %s248_s15 = scalar_lea.sflag (!%p1454_p8), [#allocation3], %s1349_s11  ;;  %s1355_s13 = scalar_lea.vmem (!%p1454_p8), [#allocation2], %s615_s27 }
  0x94   : > { %1060 = dma.done.wait (%p1292_p6), %s248_s15, 128  }
  0x95   : > { %1062 = vsyncadd (%p1292_p6), %s248_s15, 4294967168  ;;  %p1455_p4 = scmp.eq.s32.totalorder %s1153_s24, 0 }
  0x97   : > { %1064 = dma.done.wait (%p1455_p4), [#allocation6], 2064   ;;  %p1456_p10 = pmov %p1455_p4 }
  0x98   : > { %p1457_p11 = pmov %p1455_p4 }
  0x99   : > { %1066 = vsyncadd (%p1456_p10), [#allocation6], 4294965232 }
  0x9a   : > { %1068 = dma.done.wait (%p1457_p11), [#allocation9], 2064   ;;  %p1458_p1 = pmov %p1455_p4 }
  0x9b   : > { %v1098_v0 = vmov 0.0|0.0   ;;  %vm1099_vm0 = vmmov 0   ;;  %v1100_v1 = vmov 0.0   ;;  %v295_v2 = vld [vmem:[#allocation5] sm:$0xff]  ;;  %v296_v3 = vld [vmem:[#allocation5 + $0x8] sm:$0xff]  ;;  %v297_v4 = vld [vmem:[#allocation5 + $0x10] sm:$0xff] }
  0x9c   : > { %1070 = vsyncadd (%p1458_p1), [#allocation9], 4294965232  ;;  %731 = vmatprep.subr.bf16.mxu0 %v1098_v0  ;;  %693 = vmatprep.mubr.msk.f32.mxu0 %vm1099_vm0, %v1100_v1  ;;  %v732_v5 = vpack.c.bf16 %v296_v3, %v295_v2  ;;  %v298_v6 = vld [vmem:[#allocation5 + $0x18] sm:$0xff]  ;;  %v299_v8 = vld [vmem:[#allocation5 + $0x20] sm:$0xff]  ;;  %s624_s25 = sshll.u32 %s1153_s24, 7  ;;  %s293_s9 = scalar_lea.vmem [#allocation11], %s615_s27 }
  0x9d   : > { %755 = vmatprep.subr.bf16.mxu1 %v1098_v0  ;;  %728 = vmatprep.mubr.msk.f32.mxu1 %vm1099_vm0, %v1100_v1  ;;  %v735_v7 = vpack.c.bf16 %v298_v6, %v297_v4  ;;  %v300_v9 = vld [vmem:[#allocation5 + $0x28] sm:$0xff]  ;;  %v391_v12 = vld [vmem:[#allocation8 + $0x10] sm:$0xff]  ;;  %v392_v13 = vld [vmem:[#allocation8 + $0x18] sm:$0xff]  ;;  %s497_s26 = sshll.u32 %s293_s9, 4  ;;  %s1392_s7 = scalar_lea.hbm %s1441_s5, %s624_s25  ;;  %s1394_s26 = int_to_ptr.vmem [resolvable:$true] %s497_s26 }
  0x9e   : > { %733 = vmatpush3.bf16.msra.mxu0 %v732_v5  ;;  %v389_v10 = vld [vmem:[#allocation8] sm:$0xff]  ;;  %v390_v11 = vld [vmem:[#allocation8 + $0x8] sm:$0xff]  ;;  %v738_v14 = vpack.c.bf16 %v300_v9, %v299_v8  ;;  %v302_v17 = vld [vmem:[#allocation5 + $0x38] sm:$0xff]  ;;  %v759_v18 = vpack.c.bf16 %v392_v13, %v391_v12  ;;  %s484_s8 = scalar_lea.sflag [#allocation4], %s1349_s11  ;;  %s1015_s14 = scalar_lea.vmem %s1394_s26, 128 }
  0x9f   : > { %734 = vmatprep.subr.bf16.mxu0 %v1098_v0  ;;  %v756_v15 = vpack.c.bf16 %v390_v11, %v389_v10  ;;  %v301_v16 = vld [vmem:[#allocation5 + $0x30] sm:$0xff]  ;;  %v393_v19 = vld [vmem:[#allocation8 + $0x20] sm:$0xff]  ;;  %v396_v26 = vld [vmem:[#allocation8 + $0x38] sm:$0xff]  ;;  %p1016_p6 = scmp.ne.s32.totalorder %s1394_s26, %s1015_s14  ;;  %p1459_p5 = scmp.ne.s32.totalorder %s1451_s23, 0 }
  0xa0   : > { %v394_v20 = vld [vmem:[#allocation8 + $0x28] sm:$0xff]  ;;  %v741_v21 = vpack.c.bf16 %v302_v17, %v301_v16  ;;  %v303_v22 = vld [vmem:[#allocation5 + $0x40] sm:$0xff]  ;;  %v395_v25 = vld [vmem:[#allocation8 + $0x30] sm:$0xff]  ;;  %s1101_s24 = smov [#allocation11]  }
  0xa1   : > { %757 = vmatpush3.bf16.msra.mxu1 %v756_v15  ;;  %v304_v23 = vld [vmem:[#allocation5 + $0x48] sm:$0xff]  ;;  %v762_v24 = vpack.c.bf16 %v394_v20, %v393_v19  ;;  %v305_v28 = vld [vmem:[#allocation5 + $0x50] sm:$0xff]  ;;  %v306_v29 = vld [vmem:[#allocation5 + $0x58] sm:$0xff]  ;;  %v765_v30 = vpack.c.bf16 %v396_v26, %v395_v25  ;;  %p1017_p7 = pnand %p1016_p6, %p1459_p5  ;;  %s1019_s10 = sshll.u32 %s1101_s24, 4  ;;  %s1020_s10 = int_to_ptr.vmem [resolvable:$false] %s1019_s10 }
  0xa2   : > { %736 = vmatpush3.bf16.msra.mxu0 %v735_v7  ;;  %758 = vmatprep.subr.bf16.mxu1 %v1098_v0  ;;  %v744_v27 = vpack.c.bf16 %v304_v23, %v303_v22  ;;  %v397_v31 = vld [vmem:[#allocation8 + $0x40] sm:$0xff]  ;;  %v398_v32 = vld [vmem:[#allocation8 + $0x48] sm:$0xff]  ;;  %v747_v33 = vpack.c.bf16 %v306_v29, %v305_v28  ;;  %v310_v39 = vld [vmem:[#allocation5 + $0x78] sm:$0xff]  ;;  %s1021_s17 = scalar_lea.vmem %s1020_s10, 256  ;;  %p1022_p12 = scmp.lt.s32.totalorder %s1394_s26, %s1020_s10 }
  0xa3   : > { %737 = vmatprep.subr.bf16.mxu0 %v1098_v0  ;;  %v307_v34 = vld [vmem:[#allocation5 + $0x60] sm:$0xff]  ;;  %v308_v35 = vld [vmem:[#allocation5 + $0x68] sm:$0xff]  ;;  %v768_v36 = vpack.c.bf16 %v398_v32, %v397_v31  ;;  %v309_v38 = vld [vmem:[#allocation5 + $0x70] sm:$0xff]  ;;  %p1018_p9 = pneg %p1017_p7  ;;  %p1023_p3 = scmp.lt.s32.totalorder %s1021_s17, %s1015_s14 }
  0xa4   : > { %v750_v37 = vpack.c.bf16 %v308_v35, %v307_v34  ;;  %v753_v40 = vpack.c.bf16 %v310_v39, %v309_v38  ;;  %v294_v41 = vld [vmem:[%s1355_s13] sm:$0xff]  ;;  %v401_v45 = vld [vmem:[#allocation8 + $0x60] sm:$0xff]  ;;  %v621_v51 = vld [vmem:[#allocation7] ss:$0 sm:$0xff] }
  0xa5   : > { %760 = vmatpush3.bf16.msra.mxu1 %v759_v18  ;;  %v399_v42 = vld [vmem:[#allocation8 + $0x50] sm:$0xff]  ;;  %v400_v43 = vld [vmem:[#allocation8 + $0x58] sm:$0xff]  ;;  %v402_v46 = vld [vmem:[#allocation8 + $0x68] sm:$0xff]  ;;  %p1024_p13 = por %p1023_p3, %p1022_p12 }
  0xa6   : > { %739 = vmatpush3.bf16.msra.mxu0 %v738_v14  ;;  %761 = vmatprep.subr.bf16.mxu1 %v1098_v0  ;;  %v771_v44 = vpack.c.bf16 %v400_v43, %v399_v42  ;;  %v774_v47 = vpack.c.bf16 %v402_v46, %v401_v45  ;;  %v403_v48 = vld [vmem:[#allocation8 + $0x70] sm:$0xff]  ;;  %v404_v49 = vld [vmem:[#allocation8 + $0x78] sm:$0xff]  ;;  %v622_v56 = vld [vmem:[#allocation10] ss:$0 sm:$0xff] }
  0xa7   : > { %740 = vmatprep.subr.bf16.mxu0 %v1098_v0  ;;  %v777_v50 = vpack.c.bf16 %v404_v49, %v403_v48  ;;  %p1025_p0 = pnand %p1024_p13, %p1018_p9 }
  0xa9   : > { %763 = vmatpush3.bf16.msra.mxu1 %v762_v24 }
  0xaa   : > { %742 = vmatpush3.bf16.msra.mxu0 %v741_v21  ;;  %764 = vmatprep.subr.bf16.mxu1 %v1098_v0 }
  0xab   : > { %743 = vmatprep.subr.bf16.mxu0 %v1098_v0 }
  0xad   : > { %766 = vmatpush3.bf16.msra.mxu1 %v765_v30 }
  0xae   : > { %745 = vmatpush3.bf16.msra.mxu0 %v744_v27  ;;  %767 = vmatprep.subr.bf16.mxu1 %v1098_v0 }
  0xaf   : > { %746 = vmatprep.subr.bf16.mxu0 %v1098_v0 }
  0xb1   : > { %769 = vmatpush3.bf16.msra.mxu1 %v768_v36 }
  0xb2   : > { %748 = vmatpush3.bf16.msra.mxu0 %v747_v33  ;;  %770 = vmatprep.subr.bf16.mxu1 %v1098_v0 }
  0xb3   : > { %749 = vmatprep.subr.bf16.mxu0 %v1098_v0 }
  0xb5   : > { %772 = vmatpush3.bf16.msra.mxu1 %v771_v44 }
  0xb6   : > { %751 = vmatpush3.bf16.msra.mxu0 %v750_v37  ;;  %773 = vmatprep.subr.bf16.mxu1 %v1098_v0 }
  0xb7   : > { %752 = vmatprep.subr.bf16.mxu0 %v1098_v0 }
  0xb9   : > { %775 = vmatpush3.bf16.msra.mxu1 %v774_v47 }
  0xba   : > { %754 = vmatpush3.bf16.msra.mxu0 %v753_v40  ;;  %776 = vmatprep.subr.bf16.mxu1 %v1098_v0 }
  0xbd   : > { %694 = vmatmul.mubr.f32.vlgmr.msra.gmra.mrb[0].mxu0 %v294_v41  ;;  %778 = vmatpush3.bf16.msra.mxu1 %v777_v50 }
 0x190   : > { %v384_v52 = vpop.f32.mrb[0].mxu0 }
 0x191   : > { %v385_v53 = vadd.f32 %v621_v51, %v384_v52  ;;  %v695_v54 = vpop.f32.mrb[1].mxu0 }
 0x193   : > { %871 = vtanh.f32 %v385_v53 }
 0x19d   : > { %v872_v55 = vpop.eup %871 }
 0x19e   : > { %729 = vmatmul.mubr.f32.vlgmr.msra.gmra.mrb[0].mxu1 %v872_v55 }
 0x271   : > { %v478_v57 = vpop.f32.mrb[0].mxu1 }
 0x272   : > { %v479_v58 = vadd.f32 %v622_v56, %v478_v57  ;;  %v730_v59 = vpop.f32.mrb[1].mxu1 }
 0x274   : > { %482 = vst [vmem:[%s293_s9] sm:$0xff] %v479_v58 }
 0x275   : > { %1028 = shalt.err (!%p1025_p0)
}
 0x276   : > { %s1029_s22 = scalar_lea.hbm %s1392_s7, 128  ;;  %s1033_s27 = scalar_lea.hbm %s1441_s5, 256 }
 0x277   : > { %p1030_p2 = scmp.ne.s32.totalorder %s1392_s7, %s1029_s22  ;;  %p1034_p10 = scmp.lt.u32.totalorder %s1392_s7, %s1441_s5 }
 0x278   : > { %p1035_p11 = scmp.lt.u32.totalorder %s1033_s27, %s1029_s22  ;;  %p1037_p6 = scmp.lt.u32.totalorder %s1029_s22, %s1392_s7 }
 0x279   : > { %p1031_p8 = pnand %p1030_p2, %p1459_p5 }
 0x27a   : > { %p1036_p1 = por %p1035_p11, %p1034_p10 }
 0x27b   : > { %p1032_p4 = pneg %p1031_p8 }
 0x27c   : > { %p1038_p7 = por %p1037_p6, %p1036_p1 }
 0x27e   : > { %p1039_p9 = pnand %p1038_p7, %p1032_p4 }
 0x280   : > { %1042 = shalt.err (!%p1039_p9)
}
 0x281   : > { %797 = dma.vmem_to_hbm [thread:$0]  (%p1459_p5), %s1394_s26, 128, %s1392_s7, %s484_s8  }
 0x282 PF: > { %s509_s25 = sand.u32 1, %s1077_s18   ;;  %p1460_p12 = scmp.ne.s32.totalorder %s1452_s12, 0 }
 0x283   : > { %p1461_p3 = scmp.ge.s32.totalorder %s1089_s21, 2  ;;  %s510_s9 = scalar_lea.sflag [#allocation4], %s509_s25 }
 0x285   : > { %p817_p13 = pnand %p1461_p3, %p1460_p12 }
 0x287   : > { %1072 = dma.done.wait (!%p817_p13), %s510_s9, 128  }
 0x288   : > { %1074 = vsyncadd (!%p817_p13), %s510_s9, 4294967168  ;;  %p20_p0 = scmp.ge.s32.totalorder %s1273_s28, 4   ;;  %s1462_s18 = smov %s1081_s19 }
 0x289   : > { %s1463_s19 = smov %s1085_s20  ;;  %s1464_s20 = smov %s1284_s16 }
 0x28a   : > { %s1465_s21 = smov %s1273_s28  ;;  %22 = sbr.rel (!%p20_p0) target bundleno = 7 (0x7), region = 101 }
 0x291   :  { %515 = vsyncpa [#allocation3], 1 }
 0x292   :  { %517 = vsyncpa [#allocation3 + $0x1], 1 }
 0x293   :  { %518 = vsyncpa [#allocation6], 1 }
 0x294   :  { %519 = vsyncpa [#allocation9], 1 }
 0x295   :  { %520 = vsyncpa [#allocation4], 1 }
 0x296   :  { %522 = vsyncpa [#allocation4 + $0x1], 1 }

</bundles_post_ra>
